<compile_context>
chip_gen: v7x
topology: tpu7x:2x2x1
jax: 0.10.0
libtpu: 0.0.40
codegen_flags: <defaults>
</compile_context>

<pallas_src>
import jax
import jax.numpy as jnp
import numpy as np
from jax.experimental import pallas as pl
from jax.experimental.pallas import tpu as pltpu

_LANES = 1024  # lane-dense output width (8 vregs wide)


def _round_up(a, b):
    return ((a + b - 1) // b) * b


def _testmodel_kernel(p_ref, x_ref, o_ref):
    # p_ref: SMEM (16,) packed params
    # x_ref: VMEM (4, TR, 1024) -- 4 pool-window planes, lane-dense pooled pixels
    # o_ref: VMEM (TR, 1024)
    cw, cb = p_ref[0], p_ref[1]
    w1_0, w1_1, b1_0, b1_1 = p_ref[2], p_ref[3], p_ref[4], p_ref[5]
    w2_00, w2_01, w2_10, w2_11 = p_ref[6], p_ref[7], p_ref[8], p_ref[9]
    b2_0, b2_1 = p_ref[10], p_ref[11]
    w3_0, w3_1, b3 = p_ref[12], p_ref[13], p_ref[14]

    x0, x1, x2, x3 = x_ref[0], x_ref[1], x_ref[2], x_ref[3]

    # MaxPool(2,2) of Conv(1,1,k=1): the conv is a monotone affine map, so
    # max_i(cw*x_i + cb) == cw * (max_i x_i if cw>=0 else min_i x_i) + cb.
    # Compute raw max/min once, apply the affine once, select on sign(cw).
    hi = jnp.maximum(jnp.maximum(x0, x1), jnp.maximum(x2, x3))
    lo = jnp.minimum(jnp.minimum(x0, x1), jnp.minimum(x2, x3))
    pooled = jnp.where(cw >= 0.0, hi, lo)
    v = jnp.maximum(pooled * cw + cb, 0.0)          # conv affine + fused ReLU

    # Classification head as pure-VPU broadcast FMAs (PyTorch Linear: x @ W.T + b).
    h1_0 = jnp.maximum(v * w1_0 + b1_0, 0.0)
    h1_1 = jnp.maximum(v * w1_1 + b1_1, 0.0)
    h2_0 = jnp.maximum(h1_0 * w2_00 + h1_1 * w2_01 + b2_0, 0.0)
    h2_1 = jnp.maximum(h1_0 * w2_10 + h1_1 * w2_11 + b2_1, 0.0)
    o_ref[...] = h2_0 * w3_0 + h2_1 * w3_1 + b3


def test_model_forward(x, params, *, max_tile_rows=256):
    """Forward pass of TestModel. x: (N, 1, H, W) float32, NCHW.

    max_tile_rows is in 1024-lane rows (256 rows == 1 MiB of output per block,
    4 MiB of input per block; default fits every generation's default scoped VMEM).
    """
    cw, cb, w1, b1, w2, b2, w3, b3 = params
    N, C, H, W = x.shape
    Ho, Wo = H // 2, W // 2
    # Same constraint the PyTorch module imposes: Linear(1, ...) needs last dim == 1.
    assert C == 1 and Wo == 1, "TestModel requires in_channels=1 and W//2 == 1"
    assert H % 2 == 0 and W % 2 == 0

    M = N * Ho * Wo                       # number of pooled pixels
    R = max(pl.cdiv(M, _LANES), 1)        # lane-dense rows (1024 pixels per row)
    Mp = R * _LANES

    # Because W == 2, the 4 elements of pooled pixel m's 2x2 window sit at
    # x_flat[4m : 4m+4]. Pad BEFORE the transpose (single fused XLA copy under
    # jit), only up to the lane width -- never to a tile multiple.
    x_flat = x.astype(jnp.float32).reshape(-1)                 # metadata only
    x_flat = jnp.pad(x_flat, (0, 4 * (Mp - M)))
    xw = x_flat.reshape(Mp, 4).T.reshape(4, R, _LANES)         # window planes

    # Tile rows: biggest block that fits VMEM, but keep >= 2 grid steps when
    # there is enough work so megacore (v7x) can shard the parallel axis.
    if R <= 8:
        tr = R                                      # full extent (ok if < 8)
    else:
        tr = min(max_tile_rows, max(8, _round_up(pl.cdiv(R, 2), 8)))
    grid = (pl.cdiv(R, tr),)                        # ragged last block is fine

    # Pack all parameters into one SMEM scalar table (16 x f32).
    p = jnp.concatenate([
        cw.reshape(-1), cb.reshape(-1),           # 0: conv w, 1: conv b
        w1.reshape(-1), b1.reshape(-1),           # 2-3: W1[:,0], 4-5: b1
        w2.reshape(-1), b2.reshape(-1),           # 6-9: W2 row-major, 10-11: b2
        w3.reshape(-1), b3.reshape(-1),           # 12-13: W3[0,:], 14: b3
        jnp.zeros((1,), jnp.float32),             # 15: pad
    ]).astype(jnp.float32)

    # Only raise the scoped-VMEM limit if a larger-than-default tile needs it.
    vmem_needed = 2 * (4 * tr * _LANES * 4 + tr * _LANES * 4) + (1 << 20)
    cparams = pltpu.CompilerParams(
        dimension_semantics=("parallel",),
        vmem_limit_bytes=vmem_needed if vmem_needed > (14 << 20) else None,
    )

    out = pl.pallas_call(
        _testmodel_kernel,
        out_shape=jax.ShapeDtypeStruct((R, _LANES), jnp.float32),
        grid_spec=pltpu.PrefetchScalarGridSpec(
            num_scalar_prefetch=0,
            grid=grid,
            in_specs=[
                pl.BlockSpec(memory_space=pltpu.MemorySpace.SMEM),   # packed params
                pl.BlockSpec((4, tr, _LANES), lambda i: (0, i, 0)),  # window planes
            ],
            out_specs=pl.BlockSpec((tr, _LANES), lambda i: (i, 0)),
        ),
        compiler_params=cparams,
    )(p, xw)

    out = out.reshape(-1)[:M]
    # Final shape matches PyTorch: (N, 1, H//2, W//2).
    return out.reshape(N, C, Ho, Wo)


def reference(x, params):
    """Pure-JAX reference mirroring the PyTorch forward, for verification."""
    cw, cb, w1, b1, w2, b2, w3, b3 = params
    y = x * cw[0, 0, 0, 0] + cb[0]                                   # Conv2d(1,1,k=1)
    N, C, H, W = y.shape
    p = y.reshape(N, C, H // 2, 2, W // 2, 2).max(axis=(3, 5))       # MaxPool2d(2,2)
    p = jnp.maximum(p, 0.0)                                          # ReLU
    h1 = jnp.maximum(p @ w1.T + b1, 0.0)                             # Linear(1,2) + ReLU
    h2 = jnp.maximum(h1 @ w2.T + b2, 0.0)                            # Linear(2,2) + ReLU
    return h2 @ w3.T + b3                                            # Linear(2,1)


def init_params(key):
    ks = jax.random.split(key, 8)
    return (
        jax.random.normal(ks[0], (1, 1, 1, 1), jnp.float32),  # conv weight
        jax.random.normal(ks[1], (1,), jnp.float32),          # conv bias
        jax.random.normal(ks[2], (2, 1), jnp.float32),        # Linear(1,2) weight
        jax.random.normal(ks[3], (2,), jnp.float32),          # Linear(1,2) bias
        jax.random.normal(ks[4], (2, 2), jnp.float32),        # Linear(2,2) weight
        jax.random.normal(ks[5], (2,), jnp.float32),          # Linear(2,2) bias
        jax.random.normal(ks[6], (1, 2), jnp.float32),        # Linear(2,1) weight
        jax.random.normal(ks[7], (1,), jnp.float32),          # Linear(2,1) bias
    )


if __name__ == "__main__":
    key = jax.random.PRNGKey(0)
    kx, kp = jax.random.split(key)
    # batch=2, channels=1 (module requires it), H=16, W=2 so the head's
    # Linear(1, ...) sees a last dim of W//2 == 1, exactly like the PyTorch model.
    x = jax.random.normal(kx, (2, 1, 16, 2), dtype=jnp.float32)
    params = init_params(kp)

    fwd = jax.jit(test_model_forward)       # jit so pad+transpose fuse into one copy
    out = jax.block_until_ready(fwd(x, params))

    ref = reference(x, params)
    np.testing.assert_allclose(np.asarray(out), np.asarray(ref),
                               rtol=1e-5, atol=1e-5)
    assert out.shape == (2, 1, 8, 1)
    print("KERNEL_OK")
</pallas_src>

<mosaic_0001>
module attributes {stable_mosaic.version = 11 : i64} {
  func.func @_testmodel_kernel(%arg0: i32, %arg1: memref<16xf32, #tpu.memory_space<smem>>, %arg2: memref<4x1x1024xf32, #tpu.memory_space<vmem>>, %arg3: memref<1x1024xf32, #tpu.memory_space<vmem>>) attributes {dimension_semantics = [#tpu.dimension_semantics<parallel>], iteration_bounds = array<i64: 1>, scalar_prefetch = 0 : i64, scratch_operands = 0 : i64, tpu.core_type = #tpu.core_type<tc>, window_params = [{transform_indices = @transform_0, window_bounds = array<i64: 16>}, {transform_indices = @transform_1, window_bounds = array<i64: 4, 1, 1024>}, {transform_indices = @transform_2, window_bounds = array<i64: 1, 1024>}]} {
    %c0 = arith.constant 0 : index
    %0 = memref.load %arg1[%c0] : memref<16xf32, #tpu.memory_space<smem>>
    %c1 = arith.constant 1 : index
    %1 = memref.load %arg1[%c1] : memref<16xf32, #tpu.memory_space<smem>>
    %c2 = arith.constant 2 : index
    %2 = memref.load %arg1[%c2] : memref<16xf32, #tpu.memory_space<smem>>
    %c3 = arith.constant 3 : index
    %3 = memref.load %arg1[%c3] : memref<16xf32, #tpu.memory_space<smem>>
    %c4 = arith.constant 4 : index
    %4 = memref.load %arg1[%c4] : memref<16xf32, #tpu.memory_space<smem>>
    %c5 = arith.constant 5 : index
    %5 = memref.load %arg1[%c5] : memref<16xf32, #tpu.memory_space<smem>>
    %c6 = arith.constant 6 : index
    %6 = memref.load %arg1[%c6] : memref<16xf32, #tpu.memory_space<smem>>
    %c7 = arith.constant 7 : index
    %7 = memref.load %arg1[%c7] : memref<16xf32, #tpu.memory_space<smem>>
    %c8 = arith.constant 8 : index
    %8 = memref.load %arg1[%c8] : memref<16xf32, #tpu.memory_space<smem>>
    %c9 = arith.constant 9 : index
    %9 = memref.load %arg1[%c9] : memref<16xf32, #tpu.memory_space<smem>>
    %c10 = arith.constant 10 : index
    %10 = memref.load %arg1[%c10] : memref<16xf32, #tpu.memory_space<smem>>
    %c11 = arith.constant 11 : index
    %11 = memref.load %arg1[%c11] : memref<16xf32, #tpu.memory_space<smem>>
    %c12 = arith.constant 12 : index
    %12 = memref.load %arg1[%c12] : memref<16xf32, #tpu.memory_space<smem>>
    %c13 = arith.constant 13 : index
    %13 = memref.load %arg1[%c13] : memref<16xf32, #tpu.memory_space<smem>>
    %c14 = arith.constant 14 : index
    %14 = memref.load %arg1[%c14] : memref<16xf32, #tpu.memory_space<smem>>
    %c0_0 = arith.constant 0 : index
    %c0_1 = arith.constant 0 : index
    %c0_2 = arith.constant 0 : index
    %15 = vector.load %arg2[%c0_0, %c0_1, %c0_2] : memref<4x1x1024xf32, #tpu.memory_space<vmem>>, vector<1x1x1024xf32>
    %16 = vector.shape_cast %15 : vector<1x1x1024xf32> to vector<1x1024xf32>
    %c1_3 = arith.constant 1 : index
    %c0_4 = arith.constant 0 : index
    %c0_5 = arith.constant 0 : index
    %17 = vector.load %arg2[%c1_3, %c0_4, %c0_5] : memref<4x1x1024xf32, #tpu.memory_space<vmem>>, vector<1x1x1024xf32>
    %18 = vector.shape_cast %17 : vector<1x1x1024xf32> to vector<1x1024xf32>
    %c2_6 = arith.constant 2 : index
    %c0_7 = arith.constant 0 : index
    %c0_8 = arith.constant 0 : index
    %19 = vector.load %arg2[%c2_6, %c0_7, %c0_8] : memref<4x1x1024xf32, #tpu.memory_space<vmem>>, vector<1x1x1024xf32>
    %20 = vector.shape_cast %19 : vector<1x1x1024xf32> to vector<1x1024xf32>
    %c3_9 = arith.constant 3 : index
    %c0_10 = arith.constant 0 : index
    %c0_11 = arith.constant 0 : index
    %21 = vector.load %arg2[%c3_9, %c0_10, %c0_11] : memref<4x1x1024xf32, #tpu.memory_space<vmem>>, vector<1x1x1024xf32>
    %22 = vector.shape_cast %21 : vector<1x1x1024xf32> to vector<1x1024xf32>
    %23 = arith.maximumf %16, %18 : vector<1x1024xf32>
    %24 = arith.maximumf %20, %22 : vector<1x1024xf32>
    %25 = arith.maximumf %23, %24 : vector<1x1024xf32>
    %26 = arith.minimumf %16, %18 : vector<1x1024xf32>
    %27 = arith.minimumf %20, %22 : vector<1x1024xf32>
    %28 = arith.minimumf %26, %27 : vector<1x1024xf32>
    %cst = arith.constant 0.000000e+00 : f32
    %29 = arith.cmpf oge, %0, %cst : f32
    %30 = arith.select %29, %25, %28 : vector<1x1024xf32>
    %31 = vector.broadcast %0 : f32 to vector<1x1024xf32>
    %32 = arith.mulf %30, %31 : vector<1x1024xf32>
    %33 = vector.broadcast %1 : f32 to vector<1x1024xf32>
    %34 = arith.addf %32, %33 : vector<1x1024xf32>
    %cst_12 = arith.constant 0.000000e+00 : f32
    %35 = vector.broadcast %cst_12 : f32 to vector<1x1024xf32>
    %36 = arith.maximumf %34, %35 : vector<1x1024xf32>
    %37 = vector.broadcast %2 : f32 to vector<1x1024xf32>
    %38 = arith.mulf %36, %37 : vector<1x1024xf32>
    %39 = vector.broadcast %4 : f32 to vector<1x1024xf32>
    %40 = arith.addf %38, %39 : vector<1x1024xf32>
    %cst_13 = arith.constant 0.000000e+00 : f32
    %41 = vector.broadcast %cst_13 : f32 to vector<1x1024xf32>
    %42 = arith.maximumf %40, %41 : vector<1x1024xf32>
    %43 = vector.broadcast %3 : f32 to vector<1x1024xf32>
    %44 = arith.mulf %36, %43 : vector<1x1024xf32>
    %45 = vector.broadcast %5 : f32 to vector<1x1024xf32>
    %46 = arith.addf %44, %45 : vector<1x1024xf32>
    %cst_14 = arith.constant 0.000000e+00 : f32
    %47 = vector.broadcast %cst_14 : f32 to vector<1x1024xf32>
    %48 = arith.maximumf %46, %47 : vector<1x1024xf32>
    %49 = vector.broadcast %6 : f32 to vector<1x1024xf32>
    %50 = arith.mulf %42, %49 : vector<1x1024xf32>
    %51 = vector.broadcast %7 : f32 to vector<1x1024xf32>
    %52 = arith.mulf %48, %51 : vector<1x1024xf32>
    %53 = arith.addf %50, %52 : vector<1x1024xf32>
    %54 = vector.broadcast %10 : f32 to vector<1x1024xf32>
    %55 = arith.addf %53, %54 : vector<1x1024xf32>
    %cst_15 = arith.constant 0.000000e+00 : f32
    %56 = vector.broadcast %cst_15 : f32 to vector<1x1024xf32>
    %57 = arith.maximumf %55, %56 : vector<1x1024xf32>
    %58 = vector.broadcast %8 : f32 to vector<1x1024xf32>
    %59 = arith.mulf %42, %58 : vector<1x1024xf32>
    %60 = vector.broadcast %9 : f32 to vector<1x1024xf32>
    %61 = arith.mulf %48, %60 : vector<1x1024xf32>
    %62 = arith.addf %59, %61 : vector<1x1024xf32>
    %63 = vector.broadcast %11 : f32 to vector<1x1024xf32>
    %64 = arith.addf %62, %63 : vector<1x1024xf32>
    %cst_16 = arith.constant 0.000000e+00 : f32
    %65 = vector.broadcast %cst_16 : f32 to vector<1x1024xf32>
    %66 = arith.maximumf %64, %65 : vector<1x1024xf32>
    %67 = vector.broadcast %12 : f32 to vector<1x1024xf32>
    %68 = arith.mulf %57, %67 : vector<1x1024xf32>
    %69 = vector.broadcast %13 : f32 to vector<1x1024xf32>
    %70 = arith.mulf %66, %69 : vector<1x1024xf32>
    %71 = arith.addf %68, %70 : vector<1x1024xf32>
    %72 = vector.broadcast %14 : f32 to vector<1x1024xf32>
    %73 = arith.addf %71, %72 : vector<1x1024xf32>
    %c0_17 = arith.constant 0 : index
    %c0_18 = arith.constant 0 : index
    %74 = vector.load %arg3[%c0_17, %c0_18] : memref<1x1024xf32, #tpu.memory_space<vmem>>, vector<1x1024xf32>
    tpu.vector_store %arg3[%c0_17, %c0_18], %73 {strides = array<i32>} : memref<1x1024xf32, #tpu.memory_space<vmem>>, vector<1x1024xf32>,
    return
  }
  func.func @transform_0(%arg0: i32) -> i32 {
    %c0_i32 = arith.constant 0 : i32
    %c0_i32_0 = arith.constant 0 : i32
    return %c0_i32 : i32
  }
  func.func @transform_1(%arg0: i32) -> (i32, i32, i32) {
    %c0_i32 = arith.constant 0 : i32
    %c0_i32_0 = arith.constant 0 : i32
    %c0_i32_1 = arith.constant 0 : i32
    return %c0_i32, %arg0, %c0_i32_0 : i32, i32, i32
  }
  func.func @transform_2(%arg0: i32) -> (i32, i32) {
    %c0_i32 = arith.constant 0 : i32
    %c0_i32_0 = arith.constant 0 : i32
    return %arg0, %c0_i32 : i32, i32
  }
}

</mosaic_0001>

<bundles_post_ra>
// kernel: test_model_forward.1
= control target key start
LH: loop header
LB: loop body
LE: loop exit
PB: predicated region body
PF: predicated region fallthrough
CT: control target
= control target key end

     0   :  { %7 = vsyncpa [#allocation3], 0  ;;  %s167_s0 = inlined_call_operand.vmem [shape: f32[16], index: 0, kind: input, shape index: {}]   ;;  %s168_s1 = inlined_call_operand.vmem [shape: f32[4,1,1024], index: 1, kind: input, shape index: {}]   ;;  %s169_s2 = inlined_call_operand.vmem [shape: f32[1,1024], index: 2, kind: output, shape index: {}]  }
   0x1   :  { %s14_s11 = sshll.u32 %s167_s0, 4  ;;  %s15_s11 = int_to_ptr.vmem [resolvable:$true] %s14_s11 }
   0x2   :  { %s119_s12 = scalar_lea.vmem %s15_s11, 16  ;;  %p124_p1 = scmp.lt.s32.totalorder %s15_s11, %s15_s11 }
   0x3   :  { %p120_p0 = scmp.ne.s32.totalorder %s15_s11, %s119_s12  ;;  %p125_p2 = scmp.lt.s32.totalorder %s119_s12, %s119_s12 }
   0x5   :  { %p126_p3 = por %p125_p2, %p124_p1 }
   0x7   :  { %p127_p4 = pnand %p126_p3, %p120_p0 }
   0x9   :  { %130 = shalt.err (!%p127_p4)
}
   0xa   :  { %s133_s13 = smov [#allocation2]  }
   0xb   :  { %17 = dma.vmem_to_smem %s15_s11, 16, %s133_s13, [#allocation3]  }
   0xc   :  { %131 = dma.done.wait [#allocation3], 16  }
   0xd   :  { %132 = vsyncadd [#allocation3], 4294967280 }
   0xe   :  { %23 = sfence }
   0xf   :  { %s24_s14 = sld [smem:[#allocation2]]  ;;  %v39_v0 = vld [vmem:[%s168_s1] sm:$0xff]  ;;  %v115_v1 = vld [vmem:[%s168_s1 + $0x8] sm:$0xff]  ;;  %v116_v2 = vld [vmem:[%s168_s1 + $0x10] sm:$0xff]  ;;  %s101_s22 = sld [smem:[#allocation2 + $0x1]] }
  0x10   :  { %v117_v3 = vld [vmem:[%s168_s1 + $0x18] sm:$0xff]  ;;  %v46_v4 = vmax.f32 %v39_v0, %v115_v1  ;;  %v49_v6 = vmin.f32 %v39_v0, %v115_v1  ;;  %s102_s23 = sld [smem:[#allocation2 + $0x2]]  ;;  %s103_s24 = sld [smem:[#allocation2 + $0x3]] }
  0x11   :  { %v47_v5 = vmax.f32 %v116_v2, %v117_v3  ;;  %v50_v7 = vmin.f32 %v116_v2, %v117_v3  ;;  %s104_s26 = sld [smem:[#allocation2 + $0x4]]  ;;  %s105_s27 = sld [smem:[#allocation2 + $0x5]] }
  0x12   :  { %s106_s28 = sld [smem:[#allocation2 + $0x6]]  ;;  %s107_s1 = sld [smem:[#allocation2 + $0x7]] }
  0x13   :  { %v48_v8 = vmax.f32 %v46_v4, %v47_v5  ;;  %v51_v9 = vmin.f32 %v49_v6, %v50_v7  ;;  %s108_s29 = sld [smem:[#allocation2 + $0x8]]  ;;  %s109_s30 = sld [smem:[#allocation2 + $0x9]] }
  0x14   :  { %s110_s3 = sld [smem:[#allocation2 + $0xa]]  ;;  %s111_s4 = sld [smem:[#allocation2 + $0xb]] }
  0x15   :  { %p52_p5 = scmp.ge.f32.partialorder %s24_s14, 0.0  ;;  %v57_v11 = vstv %s24_s14  ;;  %v59_v13 = vstv %s101_s22  ;;  %s112_s5 = sld [smem:[#allocation2 + $0xc]] }
  0x16   :  { %v62_v16 = vstv %s102_s23  ;;  %v67_v17 = vstv %s103_s24  ;;  %s113_s6 = sld [smem:[#allocation2 + $0xd]]  ;;  %s114_s7 = sld [smem:[#allocation2 + $0xe]] }
  0x17   :  { %s53_s25 = scalar_select %p52_p5, 1, 0  ;;  %v64_v19 = vstv %s104_s26  ;;  %v69_v20 = vstv %s105_s27 }
  0x18   :  { %v72_v25 = vstv %s106_s28  ;;  %v74_v26 = vstv %s107_s1 }
  0x19   :  { %v54_v10 = vstv %s53_s25  ;;  %v80_v27 = vstv %s108_s29  ;;  %v82_v28 = vstv %s109_s30 }
  0x1a   :  { %vm55_vm0 = vcmp.eq.s32.totalorder %v54_v10, 1  ;;  %v77_v35 = vstv %s110_s3  ;;  %v85_v36 = vstv %s111_s4 }
  0x1b   :  { %v56_v12 = vsel %vm55_vm0, %v48_v8, %v51_v9  ;;  %v88_v41 = vstv %s112_s5 }
  0x1c   :  { %v58_v14 = vmul.f32 %v57_v11, %v56_v12  ;;  %v90_v42 = vstv %s113_s6  ;;  %v93_v47 = vstv %s114_s7 }
  0x1e   :  { %v60_v15 = vadd.f32 %v59_v13, %v58_v14 }
  0x20   :  { %v61_v18 = vmax.f32 %v60_v15, 0.0 }
  0x22   :  { %v63_v21 = vmul.f32 %v62_v16, %v61_v18  ;;  %v68_v22 = vmul.f32 %v67_v17, %v61_v18 }
  0x24   :  { %v65_v23 = vadd.f32 %v64_v19, %v63_v21  ;;  %v70_v24 = vadd.f32 %v69_v20, %v68_v22 }
  0x26   :  { %v66_v29 = vmax.f32 %v65_v23, 0.0  ;;  %v71_v30 = vmax.f32 %v70_v24, 0.0 }
  0x28   :  { %v73_v31 = vmul.f32 %v72_v25, %v66_v29  ;;  %v75_v32 = vmul.f32 %v74_v26, %v71_v30  ;;  %v81_v33 = vmul.f32 %v80_v27, %v66_v29  ;;  %v83_v34 = vmul.f32 %v82_v28, %v71_v30 }
  0x2a   :  { %v76_v37 = vadd.f32 %v75_v32, %v73_v31  ;;  %v84_v38 = vadd.f32 %v83_v34, %v81_v33 }
  0x2c   :  { %v78_v39 = vadd.f32 %v77_v35, %v76_v37  ;;  %v86_v40 = vadd.f32 %v85_v36, %v84_v38 }
  0x2e   :  { %v79_v43 = vmax.f32 %v78_v39, 0.0  ;;  %v87_v44 = vmax.f32 %v86_v40, 0.0 }
  0x30   :  { %v89_v45 = vmul.f32 %v88_v41, %v79_v43  ;;  %v91_v46 = vmul.f32 %v90_v42, %v87_v44 }
  0x32   :  { %v92_v48 = vadd.f32 %v91_v46, %v89_v45 }
  0x34   :  { %v94_v49 = vadd.f32 %v93_v47, %v92_v48 }
  0x36   :  { %95 = vst [vmem:[%s169_s2] sm:$0xff] %v94_v49 }
  0x37   :  { %100 = vsyncpa [#allocation3], 1 }

</bundles_post_ra>
